<compile_context>
chip_gen: v5e
topology: v5e:2x2
jax: 0.10.0
libtpu: 0.0.40
codegen_flags: <defaults>
</compile_context>

<pallas_src>
import math

import jax
import jax.numpy as jnp
import numpy as np
from jax.experimental import pallas as pl
from jax.experimental.pallas import tpu as pltpu


def _build_pe(d_model: int, max_seq_len: int) -> np.ndarray:
    """Reproduce the buffer construction from PositionalEncoder.__init__ exactly.

    Note: the reference intentionally uses exponent 2*i/d for sin and
    2*(i+1)/d for cos (not the canonical Vaswani 10000^(2k/d)); we match it.
    """
    assert d_model % 2 == 0, "PositionalEncoder requires an even d_model"
    pe = np.zeros((max_seq_len, d_model), dtype=np.float32)
    for pos in range(max_seq_len):
        for i in range(0, d_model, 2):
            pe[pos, i] = math.sin(pos / 10000 ** (2 * i / d_model))
            pe[pos, i + 1] = math.cos(pos / 10000 ** (2 * (i + 1) / d_model))
    return pe[None, :, :]  # (1, max_seq_len, d_model)


def _pos_enc_kernel(x_ref, pe_ref, o_ref, *, scale):
    # (B, tile_cols) * scale + (1, tile_cols): pure VPU scale-and-add on
    # lane-dense tiles; pe broadcasts across the batch sublanes.
    o_ref[...] = x_ref[...] * scale + pe_ref[...]


def _pick_tile_cols(total_cols: int, rows: int, itemsize: int,
                    max_block_bytes: int = 1 << 20,
                    max_lane_tile: int = 16384) -> int:
    """Largest multiple of 128 that divides total_cols, subject to a per-block
    VMEM budget (rows * tile * itemsize <= max_block_bytes). Returns 0 if no
    multiple of 128 divides total_cols (caller falls back to full extent)."""
    cap = min(total_cols, max_lane_tile,
              max(128, max_block_bytes // max(1, rows * itemsize)))
    best = 0
    for c in range(128, cap + 1, 128):
        if total_cols % c == 0:
            best = c
    return best


def positional_encoder(x: jax.Array, pe: jax.Array, d_model: int) -> jax.Array:
    """x: (B, S, D), pe: (1, max_seq_len, D). Returns x*sqrt(D) + pe[:, :S]."""
    B, S, D = x.shape
    assert D == d_model
    assert pe.shape[0] == 1 and pe.shape[2] == D and pe.shape[1] >= S
    scale = math.sqrt(d_model)

    pe = pe.astype(x.dtype)  # keep the pe block the same width as x

    # Lane-dense flattened views (free reshapes of contiguous arrays).
    total_cols = S * D
    x_flat = x.reshape(B, total_cols)

    itemsize = jnp.dtype(x.dtype).itemsize
    tile_cols = _pick_tile_cols(total_cols, B, itemsize)

    if tile_cols > 0:
        # Common path: no wrapper-side slice; the BlockSpec only ever windows
        # the first S*D columns of the full flattened pe buffer.
        pe_flat = pe.reshape(1, pe.shape[1] * D)
        num_tiles = total_cols // tile_cols
    else:
        # Degenerate path (S*D not a multiple of 128): single full-extent block.
        # Slice pe so its block shape equals the full array extent.
        pe_flat = pe[:, :S, :].reshape(1, total_cols)
        tile_cols = total_cols
        num_tiles = 1

    kernel = lambda x_ref, pe_ref, o_ref: _pos_enc_kernel(
        x_ref, pe_ref, o_ref, scale=scale)

    cost = pl.CostEstimate(
        flops=2 * B * total_cols,
        transcendentals=0,
        bytes_accessed=(2 * B * total_cols + total_cols) * itemsize,
    )

    out_flat = pl.pallas_call(
        kernel,
        out_shape=jax.ShapeDtypeStruct((B, total_cols), x.dtype),
        grid_spec=pltpu.PrefetchScalarGridSpec(
            num_scalar_prefetch=0,
            grid=(num_tiles,),
            in_specs=[
                # x: all batches on sublanes, lane-dense column tile t.
                pl.BlockSpec((B, tile_cols), lambda t: (0, t)),
                # pe: column tile t (only the first S*D columns are fetched).
                pl.BlockSpec((1, tile_cols), lambda t: (0, t)),
            ],
            out_specs=pl.BlockSpec((B, tile_cols), lambda t: (0, t)),
        ),
        compiler_params=pltpu.CompilerParams(
            dimension_semantics=("parallel",),   # shards tiles across TCs (v7x)
            vmem_limit_bytes=32 * 1024 * 1024,   # safe on v5e/v6e/v7x
        ),
        cost_estimate=cost,
    )(x_flat, pe_flat)

    return out_flat.reshape(B, S, D)


if __name__ == "__main__":
    # Small case matching the module defaults: d_model=32, max_seq_len=80.
    d_model, max_seq_len = 32, 80
    batch, seq = 2, 8

    pe = jnp.asarray(_build_pe(d_model, max_seq_len))
    x = jax.random.normal(jax.random.PRNGKey(0), (batch, seq, d_model),
                          dtype=jnp.float32)

    out = jax.block_until_ready(positional_encoder(x, pe, d_model))
    ref = x * math.sqrt(d_model) + pe[:, :seq, :]
    np.testing.assert_allclose(np.asarray(out), np.asarray(ref),
                               rtol=1e-6, atol=1e-5)

    # Larger case that exercises the multi-tile (column-tiled) grid path.
    d2, s2, b2 = 256, 64, 2
    pe2 = jnp.asarray(_build_pe(d2, max_seq_len))
    x2 = jax.random.normal(jax.random.PRNGKey(0), (b2, s2, d2),
                           dtype=jnp.float32)
    out2 = jax.block_until_ready(positional_encoder(x2, pe2, d2))
    ref2 = x2 * math.sqrt(d2) + pe2[:, :s2, :]
    np.testing.assert_allclose(np.asarray(out2), np.asarray(ref2),
                               rtol=1e-6, atol=1e-5)

    # Odd-size case exercising the full-extent fallback (S*D not % 128).
    d3, s3, b3 = 32, 5, 3          # S*D = 160, not a multiple of 128
    pe3 = jnp.asarray(_build_pe(d3, max_seq_len))
    x3 = jax.random.normal(jax.random.PRNGKey(0), (b3, s3, d3),
                           dtype=jnp.float32)
    out3 = jax.block_until_ready(positional_encoder(x3, pe3, d3))
    ref3 = x3 * math.sqrt(d3) + pe3[:, :s3, :]
    np.testing.assert_allclose(np.asarray(out3), np.asarray(ref3),
                               rtol=1e-6, atol=1e-5)

    print("KERNEL_OK")
</pallas_src>

<mosaic_0001>
module attributes {stable_mosaic.version = 11 : i64} {
  func.func @_lambda_(%arg0: i32, %arg1: memref<2x256xf32, #tpu.memory_space<vmem>>, %arg2: memref<1x256xf32, #tpu.memory_space<vmem>>, %arg3: memref<2x256xf32, #tpu.memory_space<vmem>>) attributes {dimension_semantics = [#tpu.dimension_semantics<parallel>], iteration_bounds = array<i64: 1>, scalar_prefetch = 0 : i64, scratch_operands = 0 : i64, tpu.core_type = #tpu.core_type<tc>, window_params = [{transform_indices = @transform_0, window_bounds = array<i64: 2, 256>}, {transform_indices = @transform_1, window_bounds = array<i64: 1, 256>}, {transform_indices = @transform_2, window_bounds = array<i64: 2, 256>}]} {
    %c0 = arith.constant 0 : index
    %c0_0 = arith.constant 0 : index
    %0 = vector.load %arg1[%c0, %c0_0] : memref<2x256xf32, #tpu.memory_space<vmem>>, vector<2x256xf32>
    %cst = arith.constant 5.65685415 : f32
    %1 = vector.broadcast %cst : f32 to vector<2x256xf32>
    %2 = arith.mulf %0, %1 : vector<2x256xf32>
    %c0_1 = arith.constant 0 : index
    %c0_2 = arith.constant 0 : index
    %3 = vector.load %arg2[%c0_1, %c0_2] : memref<1x256xf32, #tpu.memory_space<vmem>>, vector<1x256xf32>
    %4 = vector.broadcast %3 : vector<1x256xf32> to vector<2x256xf32>
    %5 = arith.addf %2, %4 : vector<2x256xf32>
    %c0_3 = arith.constant 0 : index
    %c0_4 = arith.constant 0 : index
    %6 = vector.load %arg3[%c0_3, %c0_4] : memref<2x256xf32, #tpu.memory_space<vmem>>, vector<2x256xf32>
    tpu.vector_store %arg3[%c0_3, %c0_4], %5 {strides = array<i32>} : memref<2x256xf32, #tpu.memory_space<vmem>>, vector<2x256xf32>,
    return
  }
  func.func @transform_0(%arg0: i32) -> (i32, i32) {
    %c0_i32 = arith.constant 0 : i32
    %c0_i32_0 = arith.constant 0 : i32
    return %c0_i32, %arg0 : i32, i32
  }
  func.func @transform_1(%arg0: i32) -> (i32, i32) {
    %c0_i32 = arith.constant 0 : i32
    %c0_i32_0 = arith.constant 0 : i32
    return %c0_i32, %arg0 : i32, i32
  }
  func.func @transform_2(%arg0: i32) -> (i32, i32) {
    %c0_i32 = arith.constant 0 : i32
    %c0_i32_0 = arith.constant 0 : i32
    return %c0_i32, %arg0 : i32, i32
  }
}

</mosaic_0001>

<bundles_post_ra>
// kernel: tpu_custom_call.1
= control target key start
LH: loop header
LB: loop body
LE: loop exit
PB: predicated region body
PF: predicated region fallthrough
CT: control target
= control target key end

     0   :  { %7 = vsyncpa [#allocation3], 0  ;;  %s178_s0 = inlined_call_operand.hbm [shape: f32[2,256], index: 0, kind: input, shape index: {}]   ;;  %s179_s1 = inlined_call_operand.hbm [shape: f32[1,2560], index: 1, kind: input, shape index: {}]   ;;  %s180_s2 = inlined_call_operand.hbm [shape: f32[2,256], index: 2, kind: output, shape index: {}]  }
   0x1   :  { %8 = vsyncpa [#allocation6], 0 }
   0x2   :  { %9 = vsyncpa [#allocation4], 0  ;;  %s15_s11 = sshll.u32 %s178_s0, 4  ;;  %s151_s12 = smov [#allocation2]   ;;  %s16_s11 = int_to_ptr.hbm [resolvable:$true] %s15_s11 }
   0x3   :  { %s17_s13 = sshll.u32 %s151_s12, 4  ;;  %s26_s16 = sshll.u32 %s179_s1, 4  ;;  %s18_s13 = int_to_ptr.vmem [resolvable:$true] %s17_s13  ;;  %s27_s16 = int_to_ptr.hbm [resolvable:$true] %s26_s16 }
   0x4   :  { %20 = dma.hbm_to_vmem [thread:$0]  %s16_s11, 64, %s18_s13, [#allocation3]  }
   0x5   :  { %s152_s17 = smov [#allocation5]  }
   0x6   :  { %s28_s18 = sshll.u32 %s152_s17, 4  ;;  %s29_s18 = int_to_ptr.vmem [resolvable:$true] %s28_s18 }
   0x7   :  { %31 = dma.hbm_to_vmem [thread:$0]  %s27_s16, 32, %s29_s18, [#allocation6]  }
   0x8   :  { %145 = dma.done.wait [#allocation3], 64  }
   0x9   :  { %146 = vsyncadd [#allocation3], 4294967232 }
   0xa   :  { %147 = dma.done.wait [#allocation6], 32  }
   0xb   :  { %148 = vsyncadd [#allocation6], 4294967264  ;;  %v40_v0 = vld [vmem:[#allocation2] sm:$0xf]  ;;  %v42_v1 = vld [vmem:[#allocation5] sm:$0x3] }
   0xc   :  { %v44_v2 = vperm.slane %v42_v1, 0  ;;  %v45_v3 = vperm.slane %v42_v1, 1  ;;  %v41_v4 = vmul.f32 5.656854, %v40_v0  ;;  %vm47_vm0 = vcmask 1041408   ;;  %s153_s0 = smov [#allocation7]  }
   0xd   :  { %s57_s19 = sshll.u32 %s153_s0, 4  ;;  %s59_s21 = sshll.u32 %s180_s2, 4  ;;  %s58_s19 = int_to_ptr.vmem [resolvable:$true] %s57_s19  ;;  %s60_s21 = int_to_ptr.hbm [resolvable:$true] %s59_s21 }
   0xe   :  { %v46_v5 = vrot.slane %v45_v3, 6 }
  0x10   :  { %v48_v6 = vsel %vm47_vm0, %v44_v2, %v46_v5 }
  0x11   :  { %v50_v7 = vadd.f32 %v48_v6, %v41_v4 }
  0x13   :  { %51 = vst [vmem:[#allocation7] sm:$0xf] %v50_v7 }
  0x14   :  { %62 = dma.vmem_to_hbm [thread:$0]  %s58_s19, 64, %s60_s21, [#allocation4]  }
  0x15   :  { %149 = dma.done.wait [#allocation4], 64  }
  0x16   :  { %150 = vsyncadd [#allocation4], 4294967232 }
  0x17   :  { %67 = vsyncpa [#allocation3], 1 }
  0x18   :  { %68 = vsyncpa [#allocation6], 1 }
  0x19   :  { %69 = vsyncpa [#allocation4], 1 }

</bundles_post_ra>
